<compile_context>
chip_gen: v7x
topology: tpu7x:2x2x1
jax: 0.10.0
libtpu: 0.0.40
codegen_flags: <defaults>
</compile_context>

<pallas_src>
import jax
import jax.numpy as jnp
from jax.experimental import pallas as pl
from jax.experimental.pallas import tpu as pltpu

_LANE = 128
_SUBLANE = 8


def _round_up(x, m):
    return ((x + m - 1) // m) * m


def _vmem_capacity_bytes():
    """Per-core VMEM capacity; conservative 64 MiB fallback (v7x-sized)."""
    try:
        info = pltpu.get_tpu_info()
        cap = getattr(info, "vmem_capacity_bytes", None)
        if cap:
            return int(cap)
    except Exception:
        pass
    return 64 * 1024 * 1024


def _logreg_proba_kernel(x_ref, w_ref, b_ref, o_ref):
    # x_ref: (tile_n, F) VMEM (streamed)
    # w_ref: (F, 2)      VMEM (resident): columns = [-coef, +coef]
    # b_ref: (1, 2)      VMEM (resident): [[-intercept, +intercept]]
    # o_ref: (tile_n, 2) VMEM: columns = [P(y=0), P(y=1)]
    #
    # Single MXU contraction, no transpose of the streamed tile.
    z = jnp.dot(x_ref[...], w_ref[...], preferred_element_type=jnp.float32)
    z = z + b_ref[...]                       # broadcast (1,2) bias
    # sigmoid on the EUP; column 0 = sigmoid(-z) == 1 - sigmoid(z).
    o_ref[...] = jax.nn.sigmoid(z).astype(o_ref.dtype)


def logistic_regression_predict_proba(x, coef, intercept, *, tile_n=None):
    """Pallas equivalent of LogisticRegressionWrapper.forward (predict_proba).

    x:         (N, F) float32
    coef:      (F,)   float32   (sklearn coef_[0])
    intercept: ()     float32   (sklearn intercept_[0])
    returns:   (N, 2) float32   columns = [P(y=0), P(y=1)]
    """
    x = jnp.asarray(x, jnp.float32)
    N, F = x.shape
    coef = jnp.asarray(coef, jnp.float32).reshape(F)
    b = jnp.asarray(intercept, jnp.float32).reshape(())

    # Two-column parameters: class-0 logit = -z, class-1 logit = +z.
    w2 = jnp.stack([-coef, coef], axis=1)           # (F, 2)
    b2 = jnp.stack([-b, b]).reshape(1, 2)           # (1, 2)

    f_pad = _round_up(F, _LANE)                     # lane-padded x row width
    vmem_cap = _vmem_capacity_bytes()

    if tile_n is None:
        # Per-row VMEM cost (f32 bytes):
        #   2 x-buffers (double-buffered stream)        : 2 * f_pad * 4
        #   2 out-buffers ((tile_n,2) lane-pads to 128) : 2 * 128 * 4
        #   ~2 full-tile elementwise intermediates      : 2 * 128 * 4
        row_bytes = 4 * (2 * f_pad + 4 * _LANE)
        tile_n = int(vmem_cap * 0.70) // row_bytes
        tile_n = min(16384, tile_n)
        if tile_n >= N:
            # Keep >= 2 grid steps for mid-size N so the "parallel" axis can
            # shard across v7x's two TensorCores; tiny N stays single-tile.
            tile_n = (N + 1) // 2 if N >= 1024 else N
    tile_n = max(_SUBLANE, _round_up(int(tile_n), _SUBLANE))

    grid = (pl.cdiv(N, tile_n),)

    # Scoped-VMEM limit sized to the actual footprint (+ headroom), clamped
    # to 90% of physical capacity and floored at the 32 MiB default.
    x_tile_bytes = tile_n * f_pad * 4
    out_tile_bytes = tile_n * _LANE * 4             # (tile_n, 2) lane-padded
    w_bytes = _round_up(F, _SUBLANE) * _LANE * 4
    footprint = 2 * x_tile_bytes + 4 * out_tile_bytes + w_bytes
    vmem_limit = max(32 << 20, min(int(vmem_cap * 0.90), footprint + (4 << 20)))

    proba = pl.pallas_call(
        _logreg_proba_kernel,
        out_shape=jax.ShapeDtypeStruct((N, 2), jnp.float32),
        grid=grid,
        in_specs=[
            pl.BlockSpec((tile_n, F), lambda i: (i, 0)),  # streamed x tile
            pl.BlockSpec((F, 2), lambda i: (0, 0)),       # resident +/- weights
            pl.BlockSpec((1, 2), lambda i: (0, 0)),       # resident +/- intercept
        ],
        out_specs=pl.BlockSpec((tile_n, 2), lambda i: (i, 0)),
        compiler_params=pltpu.CompilerParams(
            dimension_semantics=("parallel",),            # megacore sharding
            vmem_limit_bytes=vmem_limit,
        ),
    )(x, w2, b2)

    return proba


if __name__ == "__main__":
    key = jax.random.PRNGKey(0)
    kx, kw, kb = jax.random.split(key, 3)

    # --- Demo 1: tiny feature-vector detector (single-tile path) ---
    N, F = 16, 32
    x = jax.random.normal(kx, (N, F), dtype=jnp.float32)
    coef = jax.random.normal(kw, (F,), dtype=jnp.float32) * 0.1      # coef_[0]
    intercept = jax.random.normal(kb, (), dtype=jnp.float32) * 0.1   # intercept_[0]

    proba = logistic_regression_predict_proba(x, coef, intercept)
    proba = jax.block_until_ready(proba)

    p_ref = jax.nn.sigmoid(x @ coef + intercept)
    ref = jnp.stack([1.0 - p_ref, p_ref], axis=-1)
    assert proba.shape == (N, 2)
    assert jnp.allclose(proba, ref, atol=1e-5), "mismatch vs reference (demo 1)"
    assert jnp.allclose(proba.sum(axis=-1), 1.0, atol=1e-5)

    # --- Demo 2: non-divisible N -> partial tail block (no padding pass) ---
    N2, F2 = 300, 40
    kx2, kw2, kb2 = jax.random.split(jax.random.PRNGKey(1), 3)
    x2 = jax.random.normal(kx2, (N2, F2), dtype=jnp.float32)
    coef2 = jax.random.normal(kw2, (F2,), dtype=jnp.float32) * 0.1
    intercept2 = jax.random.normal(kb2, (), dtype=jnp.float32) * 0.1

    proba2 = logistic_regression_predict_proba(x2, coef2, intercept2, tile_n=128)
    proba2 = jax.block_until_ready(proba2)

    p2_ref = jax.nn.sigmoid(x2 @ coef2 + intercept2)
    ref2 = jnp.stack([1.0 - p2_ref, p2_ref], axis=-1)
    assert proba2.shape == (N2, 2)
    assert jnp.allclose(proba2, ref2, atol=1e-5), "mismatch vs reference (demo 2)"
    assert jnp.allclose(proba2.sum(axis=-1), 1.0, atol=1e-5)

    print("KERNEL_OK")
</pallas_src>

<mosaic_0001>
module attributes {stable_mosaic.version = 11 : i64} {
  func.func @_logreg_proba_kernel(%arg0: i32, %arg1: memref<16x32xf32, #tpu.memory_space<vmem>>, %arg2: memref<32x2xf32, #tpu.memory_space<vmem>>, %arg3: memref<1x2xf32, #tpu.memory_space<vmem>>, %arg4: memref<16x2xf32, #tpu.memory_space<vmem>>) attributes {dimension_semantics = [#tpu.dimension_semantics<parallel>], iteration_bounds = array<i64: 1>, scalar_prefetch = 0 : i64, scratch_operands = 0 : i64, tpu.core_type = #tpu.core_type<tc>, window_params = [{transform_indices = @transform_0, window_bounds = array<i64: 16, 32>}, {pipeline_mode = #tpu.pipeline_mode<synchronous>, transform_indices = @transform_1, window_bounds = array<i64: 32, 2>}, {pipeline_mode = #tpu.pipeline_mode<synchronous>, transform_indices = @transform_2, window_bounds = array<i64: 1, 2>}, {transform_indices = @transform_3, window_bounds = array<i64: 16, 2>}]} {
    %c0 = arith.constant 0 : index
    %c0_0 = arith.constant 0 : index
    %0 = vector.load %arg1[%c0, %c0_0] : memref<16x32xf32, #tpu.memory_space<vmem>>, vector<16x32xf32>
    %c0_1 = arith.constant 0 : index
    %c0_2 = arith.constant 0 : index
    %1 = vector.load %arg2[%c0_1, %c0_2] : memref<32x2xf32, #tpu.memory_space<vmem>>, vector<32x2xf32>
    %cst = arith.constant dense<0.000000e+00> : vector<16x2xf32>
    %2 = tpu.matmul %0, %1, %cst {dimension_numbers = #tpu.dot_dimension_numbers<[1], [0], [0], [1], [0, 0, 1, 1], [], []>} : vector<16x32xf32>, vector<32x2xf32>, vector<16x2xf32> -> vector<16x2xf32>
    %c0_3 = arith.constant 0 : index
    %c0_4 = arith.constant 0 : index
    %3 = vector.load %arg3[%c0_3, %c0_4] : memref<1x2xf32, #tpu.memory_space<vmem>>, vector<1x2xf32>
    %4 = vector.broadcast %3 : vector<1x2xf32> to vector<16x2xf32>
    %5 = arith.addf %2, %4 : vector<16x2xf32>
    %6 = arith.negf %5 : vector<16x2xf32>
    %7 = math.exp %6 : vector<16x2xf32>
    %cst_5 = arith.constant 1.000000e+00 : f32
    %8 = vector.broadcast %cst_5 : f32 to vector<16x2xf32>
    %9 = arith.addf %8, %7 : vector<16x2xf32>
    %10 = arith.divf %8, %9 : vector<16x2xf32>
    %c0_6 = arith.constant 0 : index
    %c0_7 = arith.constant 0 : index
    %11 = vector.load %arg4[%c0_6, %c0_7] : memref<16x2xf32, #tpu.memory_space<vmem>>, vector<16x2xf32>
    tpu.vector_store %arg4[%c0_6, %c0_7], %10 {strides = array<i32>} : memref<16x2xf32, #tpu.memory_space<vmem>>, vector<16x2xf32>,
    return
  }
  func.func @transform_0(%arg0: i32) -> (i32, i32) {
    %c0_i32 = arith.constant 0 : i32
    %c0_i32_0 = arith.constant 0 : i32
    return %arg0, %c0_i32 : i32, i32
  }
  func.func @transform_1(%arg0: i32) -> (i32, i32) {
    %c0_i32 = arith.constant 0 : i32
    %c0_i32_0 = arith.constant 0 : i32
    %c0_i32_1 = arith.constant 0 : i32
    return %c0_i32, %c0_i32_0 : i32, i32
  }
  func.func @transform_2(%arg0: i32) -> (i32, i32) {
    %c0_i32 = arith.constant 0 : i32
    %c0_i32_0 = arith.constant 0 : i32
    %c0_i32_1 = arith.constant 0 : i32
    return %c0_i32, %c0_i32_0 : i32, i32
  }
  func.func @transform_3(%arg0: i32) -> (i32, i32) {
    %c0_i32 = arith.constant 0 : i32
    %c0_i32_0 = arith.constant 0 : i32
    return %arg0, %c0_i32 : i32, i32
  }
}

</mosaic_0001>

<bundles_post_ra>
// kernel: tpu_custom_call.1
= control target key start
LH: loop header
LB: loop body
LE: loop exit
PB: predicated region body
PF: predicated region fallthrough
CT: control target
= control target key end

     0   :  { %vm27_vm0 = vcmask 261120   ;;  %vm121_vm1 = vcmask 15360   ;;  %s213_s1 = inlined_call_operand.vmem [shape: f32[32,2], index: 1, kind: input, shape index: {}]   ;;  %s214_s0 = inlined_call_operand.vmem [shape: f32[16,32], index: 0, kind: input, shape index: {}]   ;;  %s215_s2 = inlined_call_operand.vmem [shape: f32[1,2], index: 2, kind: input, shape index: {}]   ;;  %s216_s3 = inlined_call_operand.vmem [shape: f32[16,2], index: 3, kind: output, shape index: {}]  }
   0x1   :  { %v16_v0 = vld [vmem:[%s213_s1] sm:$0xff]  ;;  %v17_v1 = vld [vmem:[%s213_s1 + $0x8] sm:$0xff]  ;;  %v18_v2 = vld [vmem:[%s213_s1 + $0x10] sm:$0xff] }
   0x2   :  { %v150_v3 = vpack.c.bf16 %v17_v1, %v16_v0  ;;  %v19_v4 = vld [vmem:[%s213_s1 + $0x18] sm:$0xff]  ;;  %v14_v5 = vld [vmem:[%s214_s0] sm:$0xff]  ;;  %v15_v7 = vld [vmem:[%s214_s0 + $0x8] sm:$0xff] }
   0x3   :  { %v154_v6 = vpack.c.bf16 %v19_v4, %v18_v2  ;;  %147 = vmatprep.mubr.msk.f32.mxu0 %vm27_vm0, %v14_v5  ;;  %v128_v8 = vld [vmem:[%s215_s2] ss:$0 sm:$0xff] }
   0x4   :  { %151 = vmatprep.subr.bf16.mxu0 %v150_v3 }
   0x5   :  { %153 = vmatpush3.bf16.msra.mxu0 %v150_v3 }
   0x6   :  { %155 = vmatprep.subr.bf16.mxu0 %v154_v6 }
   0x9   :  { %157 = vmatpush3.bf16.msra.mxu0 %v154_v6 }
   0xc   :  { %148 = vmatmul.mubr.msk.f32.vlgmr.msra.gmra.mrb[0].mxu0 %vm27_vm0, %v15_v7 }
  0xdf   :  { %v149_v9 = vpop.f32.mrb[0].mxu0 }
  0xe0   :  { %v106_v10 = vadd.f32 %v149_v9, %v128_v8  ;;  %v100_v11 = vpop.f32.mrb[1].mxu0 }
  0xe1   :  { %v101_v12 = vadd.f32 %v128_v8, %v100_v11 }
  0xe2   :  { %v132_v13 = vmul.f32 -1.442695, %v106_v10 }
  0xe3   :  { %v131_v14 = vmul.f32 -1.442695, %v101_v12 }
  0xe4   :  { %158 = vpow2.f32 %v132_v13 }
  0xe5   :  { %160 = vpow2.f32 %v131_v14 }
  0xee   :  { %v159_v15 = vpop.eup %158 }
  0xef   :  { %v161_v16 = vpop.eup %160  ;;  %v116_v17 = vadd.f32 1.0, %v159_v15 }
  0xf0   :  { %v115_v18 = vadd.f32 1.0, %v161_v16 }
  0xf1   :  { %162 = vrcp.f32 %v116_v17 }
  0xf2   :  { %164 = vrcp.f32 %v115_v18 }
  0xfb   :  { %v163_v19 = vpop.eup %162 }
  0xfc   :  { %v165_v20 = vpop.eup %164  ;;  %123 = vst.msk [vmem:[%s216_s3 + $0x8] sm:$0xff] %vm121_vm1, %v163_v19 }
  0xfd   :  { %122 = vst.msk [vmem:[%s216_s3] sm:$0xff] %vm121_vm1, %v165_v20 }

</bundles_post_ra>
